<compile_context>
chip_gen: v7x
topology: tpu7x:2x2x1
jax: 0.10.0
libtpu: 0.0.40
codegen_flags: <defaults>
</compile_context>

<pallas_src>
import numpy as np

import jax
import jax.numpy as jnp
from jax import lax
from jax.experimental import pallas as pl
from jax.experimental.pallas import tpu as pltpu


_MXU_CHANNEL_THRESHOLD = 32   # use the MXU for the channel contraction above this width


def _make_kernel(nb, c, hw, shifts, center_k, use_mxu):
    """Builds the per-grid-step kernel body.

    Block shapes seen by the kernel:
      x_ref : (nb, c, hw)       input images, spatial flattened onto lanes
      w_ref : (9, c) [MXU] or (9, c, 1) [VPU]  fused depthwise*pointwise weights (k=dy*3+dx)
      m_ref : (9, 1, hw)        {0,1} boundary masks, one per 3x3 tap
      o_ref : (nb, hw)          sigmoid(separable_conv(x))
    """

    def kernel(x_ref, w_ref, m_ref, o_ref):
        for b in range(nb):   # nb is small & static; iterations are independent
            # ---- 1) channel contraction -> 9 tap planes T_k of shape (1, hw) ----------
            if use_mxu:
                # (9,c) x (c,hw) on the MXU (idle otherwise).  9 output rows is poor MXU
                # utilization, but the slot has full slack here so it is ~free throughput.
                t9 = jnp.dot(w_ref[...], x_ref[b].astype(jnp.float32),
                             preferred_element_type=jnp.float32)          # (9, hw)
                taps = [t9[k:k + 1, :] for k in range(9)]                 # tiny (1,hw) views
            else:
                xcl = x_ref[b].astype(jnp.float32)                        # (c, hw), one load
                # 9 independent multiply + cross-sublane-reduce chains: the VALU only sees
                # the multiplies; the channel-sum adds go to the XLU; nothing serializes on
                # a single accumulator.
                taps = [jnp.sum(w_ref[k] * xcl, axis=0, keepdims=True)    # (1, hw)
                        for k in range(9)]

            # ---- 2) combine taps with lane rotations + boundary masks ------------------
            # out[l] needs T_k[l + d_k]; pltpu.roll(x, s)[i] == x[(i - s) mod hw] => s=-d_k.
            # Source positions outside the image are zeroed by the static mask — this IS
            # the conv's zero padding (no halo buffer, no misaligned stores).
            parts = []
            for k, d in enumerate(shifts):
                t = taps[k]
                if d != 0:
                    t = pltpu.roll(t, shift=(-d) % hw, axis=1)
                if k != center_k:
                    t = t * m_ref[k]
                parts.append(t)
            # Short tree-sum: dependency chains ~log2(9) deep instead of a 9-long chain.
            while len(parts) > 1:
                nxt = [parts[i] + parts[i + 1] for i in range(0, len(parts) - 1, 2)]
                if len(parts) % 2:
                    nxt.append(parts[-1])
                parts = nxt
            acc = parts[0]                                                 # (1, hw) float32

            # ---- 3) sigmoid: exp on the EUP + reciprocal (no VPU divide) ---------------
            y = pl.reciprocal(1.0 + jnp.exp(-acc), approx=False)
            o_ref[pl.ds(b, 1), :] = y.astype(o_ref.dtype)

    return kernel


def _tap_geometry(h, w):
    """Static per-tap flattened shifts and {0,1} boundary masks (tap index k = dy*3 + dx)."""
    offs = [(dy - 1, dx - 1) for dy in range(3) for dx in range(3)]
    shifts = tuple(a * w + b for a, b in offs)
    rows = np.arange(h).reshape(h, 1)
    cols = np.arange(w).reshape(1, w)
    masks = np.stack([
        (((rows + a) >= 0) & ((rows + a) < h) &
         ((cols + b) >= 0) & ((cols + b) < w)).reshape(h * w)
        for a, b in offs]).astype(np.float32)                              # (9, h*w)
    return shifts, masks.reshape(9, 1, h * w), offs.index((0, 0))


@jax.jit
def regression_map_forward(x, dw_weight, pw_weight):
    """x: (N, C, H, W). dw_weight: (C,1,3,3) or (C,3,3). pw_weight: (1,C,1,1) or (1,C).

    Returns (mask, None) like the PyTorch module, mask: (N, 1, H, W) float32.
    """
    n, c, h, w = x.shape
    hw = h * w
    use_mxu = c >= _MXU_CHANNEL_THRESHOLD

    # Fuse depthwise (groups=C) and pointwise (C->1) weights into one effective 3x3 kernel
    # per channel (both convs are linear; exact up to FP reassociation): (9, C), k=dy*3+dx.
    dw = dw_weight.astype(jnp.float32).reshape(c, 3, 3)
    pw = pw_weight.astype(jnp.float32).reshape(c)
    w9c = jnp.transpose((dw * pw[:, None, None]).reshape(c, 9), (1, 0))
    w_arg = w9c if use_mxu else w9c[:, :, None]       # (9,C) for MXU dot, (9,C,1) for VPU
    w_ndim = w_arg.ndim

    shifts, masks_np, center_k = _tap_geometry(h, w)
    masks = jnp.asarray(masks_np)                     # (9, 1, HW)
    # TODO(synk): for very large H*W, generate the masks in-kernel from iota to avoid the
    # (9, HW) f32 mask array's HBM traffic.

    # ---- VMEM budget (generation-aware) & batch blocking --------------------------------
    try:
        info = pltpu.get_tpu_info()
        phys_vmem = int(getattr(info, "vmem_capacity_bytes", 0)) or (64 << 20)
    except Exception:
        phys_vmem = 64 << 20                          # conservative: v7x per-core VMEM
    vmem_limit = int(max(min(phys_vmem * 3 // 4, 100 << 20), 32 << 20))

    elt = jnp.dtype(x.dtype).itemsize
    per_image = c * hw * elt + hw * 4                 # in + out bytes per image
    budget = vmem_limit // 2                          # headroom for double-buffering etc.
    nb = 1
    for cand in range(1, min(n, 8) + 1):              # cap the in-kernel unroll at 8 images
        if n % cand == 0 and 2 * cand * per_image <= budget:
            nb = cand
    # TODO(synk): when even 2*per_image exceeds the budget, add a row-block grid axis with
    # an in-kernel halo (this also gives v7x's second TensorCore a "parallel" axis).

    # Lane-dense layout: flatten H*W onto lanes (free reshape of contiguous NCHW).
    x2 = x.reshape(n, c, hw)

    cost = pl.CostEstimate(
        flops=2 * 9 * (c + 1) * hw * n,
        transcendentals=2 * n * hw,
        bytes_accessed=n * c * hw * elt + n * hw * 4 + w9c.size * 4 + masks.size * 4)

    out = pl.pallas_call(
        _make_kernel(nb, c, hw, shifts, center_k, use_mxu),
        out_shape=jax.ShapeDtypeStruct((n, hw), jnp.float32),
        grid_spec=pltpu.PrefetchScalarGridSpec(
            num_scalar_prefetch=0,
            grid=(n // nb,),
            in_specs=[
                pl.BlockSpec((nb, c, hw), lambda i: (i, 0, 0)),
                pl.BlockSpec(w_arg.shape, lambda i: (0,) * w_ndim),
                pl.BlockSpec((9, 1, hw), lambda i: (0, 0, 0)),
            ],
            out_specs=pl.BlockSpec((nb, hw), lambda i: (i, 0)),
        ),
        compiler_params=pltpu.CompilerParams(
            dimension_semantics=("parallel",),
            vmem_limit_bytes=vmem_limit),
        cost_estimate=cost,
    )(x2, w_arg, masks)

    return out.reshape(n, 1, h, w), None


def _reference(x, dw_weight, pw_weight):
    """Pure-JAX reference: depthwise 3x3 (groups=C) -> pointwise 1x1 -> sigmoid."""
    c = x.shape[1]
    dw_k = dw_weight.reshape(c, 1, 3, 3)              # OIHW with feature_group_count=C
    depth = lax.conv_general_dilated(
        x, dw_k, window_strides=(1, 1), padding="SAME",
        feature_group_count=c,
        dimension_numbers=("NCHW", "OIHW", "NCHW"))
    pw_k = pw_weight.reshape(1, c, 1, 1)              # (out=1, in=C, 1, 1)
    point = lax.conv_general_dilated(
        depth, pw_k, window_strides=(1, 1), padding="VALID",
        dimension_numbers=("NCHW", "OIHW", "NCHW"))
    return jax.nn.sigmoid(point)


if __name__ == "__main__":
    # Small shapes consistent with the module's forward (NCHW).
    N, C, H, W = 2, 4, 16, 16

    key = jax.random.PRNGKey(0)
    kx, kdw, kpw = jax.random.split(key, 3)

    x = jax.random.normal(kx, (N, C, H, W), dtype=jnp.float32)
    # PyTorch-native parameter shapes: depthwise (C,1,3,3), pointwise (1,C,1,1).
    dw_weight = jax.random.normal(kdw, (C, 1, 3, 3), dtype=jnp.float32) * 0.1
    pw_weight = jax.random.normal(kpw, (1, C, 1, 1), dtype=jnp.float32) * 0.1

    mask, none_out = regression_map_forward(x, dw_weight, pw_weight)
    mask = jax.block_until_ready(mask)

    ref = jax.block_until_ready(_reference(x, dw_weight, pw_weight))

    assert mask.shape == (N, 1, H, W), mask.shape
    assert none_out is None
    if not jnp.allclose(mask, ref, atol=1e-5, rtol=1e-5):
        raise AssertionError("Pallas kernel output does not match reference conv")

    print("KERNEL_OK")
</pallas_src>

<mosaic_0001>
module attributes {stable_mosaic.version = 11 : i64} {
  func.func @kernel(%arg0: i32, %arg1: memref<2x4x256xf32, #tpu.memory_space<vmem>>, %arg2: memref<9x4x1xf32, #tpu.memory_space<vmem>>, %arg3: memref<9x1x256xf32, #tpu.memory_space<vmem>>, %arg4: memref<2x256xf32, #tpu.memory_space<vmem>>) attributes {dimension_semantics = [#tpu.dimension_semantics<parallel>], iteration_bounds = array<i64: 1>, scalar_prefetch = 0 : i64, scratch_operands = 0 : i64, tpu.core_type = #tpu.core_type<tc>, window_params = [{transform_indices = @transform_0, window_bounds = array<i64: 2, 4, 256>}, {pipeline_mode = #tpu.pipeline_mode<synchronous>, transform_indices = @transform_1, window_bounds = array<i64: 9, 4, 1>}, {pipeline_mode = #tpu.pipeline_mode<synchronous>, transform_indices = @transform_2, window_bounds = array<i64: 9, 1, 256>}, {transform_indices = @transform_3, window_bounds = array<i64: 2, 256>}]} {
    %c0 = arith.constant 0 : index
    %c0_0 = arith.constant 0 : index
    %c0_1 = arith.constant 0 : index
    %0 = vector.load %arg1[%c0, %c0_0, %c0_1] : memref<2x4x256xf32, #tpu.memory_space<vmem>>, vector<1x4x256xf32>
    %1 = vector.shape_cast %0 : vector<1x4x256xf32> to vector<4x256xf32>
    %c0_2 = arith.constant 0 : index
    %c0_3 = arith.constant 0 : index
    %c0_4 = arith.constant 0 : index
    %2 = vector.load %arg2[%c0_2, %c0_3, %c0_4] : memref<9x4x1xf32, #tpu.memory_space<vmem>>, vector<1x4x1xf32>
    %3 = vector.shape_cast %2 : vector<1x4x1xf32> to vector<4x1xf32>
    %4 = vector.broadcast %3 : vector<4x1xf32> to vector<4x256xf32>
    %5 = arith.mulf %4, %1 : vector<4x256xf32>
    %cst = arith.constant dense<0.000000e+00> : vector<256xf32>
    %6 = vector.multi_reduction <add>, %5, %cst [0] : vector<4x256xf32> to vector<256xf32>
    %7 = vector.shape_cast %6 : vector<256xf32> to vector<1x256xf32>
    %c1 = arith.constant 1 : index
    %c0_5 = arith.constant 0 : index
    %c0_6 = arith.constant 0 : index
    %8 = vector.load %arg2[%c1, %c0_5, %c0_6] : memref<9x4x1xf32, #tpu.memory_space<vmem>>, vector<1x4x1xf32>
    %9 = vector.shape_cast %8 : vector<1x4x1xf32> to vector<4x1xf32>
    %10 = vector.broadcast %9 : vector<4x1xf32> to vector<4x256xf32>
    %11 = arith.mulf %10, %1 : vector<4x256xf32>
    %cst_7 = arith.constant dense<0.000000e+00> : vector<256xf32>
    %12 = vector.multi_reduction <add>, %11, %cst_7 [0] : vector<4x256xf32> to vector<256xf32>
    %13 = vector.shape_cast %12 : vector<256xf32> to vector<1x256xf32>
    %c2 = arith.constant 2 : index
    %c0_8 = arith.constant 0 : index
    %c0_9 = arith.constant 0 : index
    %14 = vector.load %arg2[%c2, %c0_8, %c0_9] : memref<9x4x1xf32, #tpu.memory_space<vmem>>, vector<1x4x1xf32>
    %15 = vector.shape_cast %14 : vector<1x4x1xf32> to vector<4x1xf32>
    %16 = vector.broadcast %15 : vector<4x1xf32> to vector<4x256xf32>
    %17 = arith.mulf %16, %1 : vector<4x256xf32>
    %cst_10 = arith.constant dense<0.000000e+00> : vector<256xf32>
    %18 = vector.multi_reduction <add>, %17, %cst_10 [0] : vector<4x256xf32> to vector<256xf32>
    %19 = vector.shape_cast %18 : vector<256xf32> to vector<1x256xf32>
    %c3 = arith.constant 3 : index
    %c0_11 = arith.constant 0 : index
    %c0_12 = arith.constant 0 : index
    %20 = vector.load %arg2[%c3, %c0_11, %c0_12] : memref<9x4x1xf32, #tpu.memory_space<vmem>>, vector<1x4x1xf32>
    %21 = vector.shape_cast %20 : vector<1x4x1xf32> to vector<4x1xf32>
    %22 = vector.broadcast %21 : vector<4x1xf32> to vector<4x256xf32>
    %23 = arith.mulf %22, %1 : vector<4x256xf32>
    %cst_13 = arith.constant dense<0.000000e+00> : vector<256xf32>
    %24 = vector.multi_reduction <add>, %23, %cst_13 [0] : vector<4x256xf32> to vector<256xf32>
    %25 = vector.shape_cast %24 : vector<256xf32> to vector<1x256xf32>
    %c4 = arith.constant 4 : index
    %c0_14 = arith.constant 0 : index
    %c0_15 = arith.constant 0 : index
    %26 = vector.load %arg2[%c4, %c0_14, %c0_15] : memref<9x4x1xf32, #tpu.memory_space<vmem>>, vector<1x4x1xf32>
    %27 = vector.shape_cast %26 : vector<1x4x1xf32> to vector<4x1xf32>
    %28 = vector.broadcast %27 : vector<4x1xf32> to vector<4x256xf32>
    %29 = arith.mulf %28, %1 : vector<4x256xf32>
    %cst_16 = arith.constant dense<0.000000e+00> : vector<256xf32>
    %30 = vector.multi_reduction <add>, %29, %cst_16 [0] : vector<4x256xf32> to vector<256xf32>
    %31 = vector.shape_cast %30 : vector<256xf32> to vector<1x256xf32>
    %c5 = arith.constant 5 : index
    %c0_17 = arith.constant 0 : index
    %c0_18 = arith.constant 0 : index
    %32 = vector.load %arg2[%c5, %c0_17, %c0_18] : memref<9x4x1xf32, #tpu.memory_space<vmem>>, vector<1x4x1xf32>
    %33 = vector.shape_cast %32 : vector<1x4x1xf32> to vector<4x1xf32>
    %34 = vector.broadcast %33 : vector<4x1xf32> to vector<4x256xf32>
    %35 = arith.mulf %34, %1 : vector<4x256xf32>
    %cst_19 = arith.constant dense<0.000000e+00> : vector<256xf32>
    %36 = vector.multi_reduction <add>, %35, %cst_19 [0] : vector<4x256xf32> to vector<256xf32>
    %37 = vector.shape_cast %36 : vector<256xf32> to vector<1x256xf32>
    %c6 = arith.constant 6 : index
    %c0_20 = arith.constant 0 : index
    %c0_21 = arith.constant 0 : index
    %38 = vector.load %arg2[%c6, %c0_20, %c0_21] : memref<9x4x1xf32, #tpu.memory_space<vmem>>, vector<1x4x1xf32>
    %39 = vector.shape_cast %38 : vector<1x4x1xf32> to vector<4x1xf32>
    %40 = vector.broadcast %39 : vector<4x1xf32> to vector<4x256xf32>
    %41 = arith.mulf %40, %1 : vector<4x256xf32>
    %cst_22 = arith.constant dense<0.000000e+00> : vector<256xf32>
    %42 = vector.multi_reduction <add>, %41, %cst_22 [0] : vector<4x256xf32> to vector<256xf32>
    %43 = vector.shape_cast %42 : vector<256xf32> to vector<1x256xf32>
    %c7 = arith.constant 7 : index
    %c0_23 = arith.constant 0 : index
    %c0_24 = arith.constant 0 : index
    %44 = vector.load %arg2[%c7, %c0_23, %c0_24] : memref<9x4x1xf32, #tpu.memory_space<vmem>>, vector<1x4x1xf32>
    %45 = vector.shape_cast %44 : vector<1x4x1xf32> to vector<4x1xf32>
    %46 = vector.broadcast %45 : vector<4x1xf32> to vector<4x256xf32>
    %47 = arith.mulf %46, %1 : vector<4x256xf32>
    %cst_25 = arith.constant dense<0.000000e+00> : vector<256xf32>
    %48 = vector.multi_reduction <add>, %47, %cst_25 [0] : vector<4x256xf32> to vector<256xf32>
    %49 = vector.shape_cast %48 : vector<256xf32> to vector<1x256xf32>
    %c8 = arith.constant 8 : index
    %c0_26 = arith.constant 0 : index
    %c0_27 = arith.constant 0 : index
    %50 = vector.load %arg2[%c8, %c0_26, %c0_27] : memref<9x4x1xf32, #tpu.memory_space<vmem>>, vector<1x4x1xf32>
    %51 = vector.shape_cast %50 : vector<1x4x1xf32> to vector<4x1xf32>
    %52 = vector.broadcast %51 : vector<4x1xf32> to vector<4x256xf32>
    %53 = arith.mulf %52, %1 : vector<4x256xf32>
    %cst_28 = arith.constant dense<0.000000e+00> : vector<256xf32>
    %54 = vector.multi_reduction <add>, %53, %cst_28 [0] : vector<4x256xf32> to vector<256xf32>
    %55 = vector.shape_cast %54 : vector<256xf32> to vector<1x256xf32>
    %c17_i32 = arith.constant 17 : i32
    %56 = tpu.dynamic_rotate %7 by %c17_i32 dim 1 : vector<1x256xf32>, i32 -> vector<1x256xf32>
    %c0_29 = arith.constant 0 : index
    %c0_30 = arith.constant 0 : index
    %c0_31 = arith.constant 0 : index
    %57 = vector.load %arg3[%c0_29, %c0_30, %c0_31] : memref<9x1x256xf32, #tpu.memory_space<vmem>>, vector<1x1x256xf32>
    %58 = vector.shape_cast %57 : vector<1x1x256xf32> to vector<1x256xf32>
    %59 = arith.mulf %56, %58 : vector<1x256xf32>
    %c16_i32 = arith.constant 16 : i32
    %60 = tpu.dynamic_rotate %13 by %c16_i32 dim 1 : vector<1x256xf32>, i32 -> vector<1x256xf32>
    %c1_32 = arith.constant 1 : index
    %c0_33 = arith.constant 0 : index
    %c0_34 = arith.constant 0 : index
    %61 = vector.load %arg3[%c1_32, %c0_33, %c0_34] : memref<9x1x256xf32, #tpu.memory_space<vmem>>, vector<1x1x256xf32>
    %62 = vector.shape_cast %61 : vector<1x1x256xf32> to vector<1x256xf32>
    %63 = arith.mulf %60, %62 : vector<1x256xf32>
    %c15_i32 = arith.constant 15 : i32
    %64 = tpu.dynamic_rotate %19 by %c15_i32 dim 1 : vector<1x256xf32>, i32 -> vector<1x256xf32>
    %c2_35 = arith.constant 2 : index
    %c0_36 = arith.constant 0 : index
    %c0_37 = arith.constant 0 : index
    %65 = vector.load %arg3[%c2_35, %c0_36, %c0_37] : memref<9x1x256xf32, #tpu.memory_space<vmem>>, vector<1x1x256xf32>
    %66 = vector.shape_cast %65 : vector<1x1x256xf32> to vector<1x256xf32>
    %67 = arith.mulf %64, %66 : vector<1x256xf32>
    %c1_i32 = arith.constant 1 : i32
    %68 = tpu.dynamic_rotate %25 by %c1_i32 dim 1 : vector<1x256xf32>, i32 -> vector<1x256xf32>
    %c3_38 = arith.constant 3 : index
    %c0_39 = arith.constant 0 : index
    %c0_40 = arith.constant 0 : index
    %69 = vector.load %arg3[%c3_38, %c0_39, %c0_40] : memref<9x1x256xf32, #tpu.memory_space<vmem>>, vector<1x1x256xf32>
    %70 = vector.shape_cast %69 : vector<1x1x256xf32> to vector<1x256xf32>
    %71 = arith.mulf %68, %70 : vector<1x256xf32>
    %c255_i32 = arith.constant 255 : i32
    %72 = tpu.dynamic_rotate %37 by %c255_i32 dim 1 : vector<1x256xf32>, i32 -> vector<1x256xf32>
    %c5_41 = arith.constant 5 : index
    %c0_42 = arith.constant 0 : index
    %c0_43 = arith.constant 0 : index
    %73 = vector.load %arg3[%c5_41, %c0_42, %c0_43] : memref<9x1x256xf32, #tpu.memory_space<vmem>>, vector<1x1x256xf32>
    %74 = vector.shape_cast %73 : vector<1x1x256xf32> to vector<1x256xf32>
    %75 = arith.mulf %72, %74 : vector<1x256xf32>
    %c241_i32 = arith.constant 241 : i32
    %76 = tpu.dynamic_rotate %43 by %c241_i32 dim 1 : vector<1x256xf32>, i32 -> vector<1x256xf32>
    %c6_44 = arith.constant 6 : index
    %c0_45 = arith.constant 0 : index
    %c0_46 = arith.constant 0 : index
    %77 = vector.load %arg3[%c6_44, %c0_45, %c0_46] : memref<9x1x256xf32, #tpu.memory_space<vmem>>, vector<1x1x256xf32>
    %78 = vector.shape_cast %77 : vector<1x1x256xf32> to vector<1x256xf32>
    %79 = arith.mulf %76, %78 : vector<1x256xf32>
    %c240_i32 = arith.constant 240 : i32
    %80 = tpu.dynamic_rotate %49 by %c240_i32 dim 1 : vector<1x256xf32>, i32 -> vector<1x256xf32>
    %c7_47 = arith.constant 7 : index
    %c0_48 = arith.constant 0 : index
    %c0_49 = arith.constant 0 : index
    %81 = vector.load %arg3[%c7_47, %c0_48, %c0_49] : memref<9x1x256xf32, #tpu.memory_space<vmem>>, vector<1x1x256xf32>
    %82 = vector.shape_cast %81 : vector<1x1x256xf32> to vector<1x256xf32>
    %83 = arith.mulf %80, %82 : vector<1x256xf32>
    %c239_i32 = arith.constant 239 : i32
    %84 = tpu.dynamic_rotate %55 by %c239_i32 dim 1 : vector<1x256xf32>, i32 -> vector<1x256xf32>
    %c8_50 = arith.constant 8 : index
    %c0_51 = arith.constant 0 : index
    %c0_52 = arith.constant 0 : index
    %85 = vector.load %arg3[%c8_50, %c0_51, %c0_52] : memref<9x1x256xf32, #tpu.memory_space<vmem>>, vector<1x1x256xf32>
    %86 = vector.shape_cast %85 : vector<1x1x256xf32> to vector<1x256xf32>
    %87 = arith.mulf %84, %86 : vector<1x256xf32>
    %88 = arith.addf %59, %63 : vector<1x256xf32>
    %89 = arith.addf %67, %71 : vector<1x256xf32>
    %90 = arith.addf %31, %75 : vector<1x256xf32>
    %91 = arith.addf %79, %83 : vector<1x256xf32>
    %92 = arith.addf %88, %89 : vector<1x256xf32>
    %93 = arith.addf %90, %91 : vector<1x256xf32>
    %94 = arith.addf %92, %93 : vector<1x256xf32>
    %95 = arith.addf %94, %87 : vector<1x256xf32>
    %cst_53 = arith.constant 0.000000e+00 : f32
    %96 = vector.broadcast %cst_53 : f32 to vector<1x256xf32>
    %97 = arith.subf %96, %95 : vector<1x256xf32>
    %98 = math.exp %97 : vector<1x256xf32>
    %cst_54 = arith.constant 1.000000e+00 : f32
    %99 = vector.broadcast %cst_54 : f32 to vector<1x256xf32>
    %100 = arith.addf %99, %98 : vector<1x256xf32>
    %101 = tpu.reciprocal %100 : vector<1x256xf32> -> vector<1x256xf32>
    %c0_55 = arith.constant 0 : index
    %c0_56 = arith.constant 0 : index
    %102 = vector.load %arg4[%c0_55, %c0_56] : memref<2x256xf32, #tpu.memory_space<vmem>>, vector<1x256xf32>
    tpu.vector_store %arg4[%c0_55, %c0_56], %101 {strides = array<i32>} : memref<2x256xf32, #tpu.memory_space<vmem>>, vector<1x256xf32>,
    %c1_57 = arith.constant 1 : index
    %c0_58 = arith.constant 0 : index
    %c0_59 = arith.constant 0 : index
    %103 = vector.load %arg1[%c1_57, %c0_58, %c0_59] : memref<2x4x256xf32, #tpu.memory_space<vmem>>, vector<1x4x256xf32>
    %104 = vector.shape_cast %103 : vector<1x4x256xf32> to vector<4x256xf32>
    %c0_60 = arith.constant 0 : index
    %c0_61 = arith.constant 0 : index
    %c0_62 = arith.constant 0 : index
    %105 = vector.load %arg2[%c0_60, %c0_61, %c0_62] : memref<9x4x1xf32, #tpu.memory_space<vmem>>, vector<1x4x1xf32>
    %106 = vector.shape_cast %105 : vector<1x4x1xf32> to vector<4x1xf32>
    %107 = vector.broadcast %106 : vector<4x1xf32> to vector<4x256xf32>
    %108 = arith.mulf %107, %104 : vector<4x256xf32>
    %cst_63 = arith.constant dense<0.000000e+00> : vector<256xf32>
    %109 = vector.multi_reduction <add>, %108, %cst_63 [0] : vector<4x256xf32> to vector<256xf32>
    %110 = vector.shape_cast %109 : vector<256xf32> to vector<1x256xf32>
    %c1_64 = arith.constant 1 : index
    %c0_65 = arith.constant 0 : index
    %c0_66 = arith.constant 0 : index
    %111 = vector.load %arg2[%c1_64, %c0_65, %c0_66] : memref<9x4x1xf32, #tpu.memory_space<vmem>>, vector<1x4x1xf32>
    %112 = vector.shape_cast %111 : vector<1x4x1xf32> to vector<4x1xf32>
    %113 = vector.broadcast %112 : vector<4x1xf32> to vector<4x256xf32>
    %114 = arith.mulf %113, %104 : vector<4x256xf32>
    %cst_67 = arith.constant dense<0.000000e+00> : vector<256xf32>
    %115 = vector.multi_reduction <add>, %114, %cst_67 [0] : vector<4x256xf32> to vector<256xf32>
    %116 = vector.shape_cast %115 : vector<256xf32> to vector<1x256xf32>
    %c2_68 = arith.constant 2 : index
    %c0_69 = arith.constant 0 : index
    %c0_70 = arith.constant 0 : index
    %117 = vector.load %arg2[%c2_68, %c0_69, %c0_70] : memref<9x4x1xf32, #tpu.memory_space<vmem>>, vector<1x4x1xf32>
    %118 = vector.shape_cast %117 : vector<1x4x1xf32> to vector<4x1xf32>
    %119 = vector.broadcast %118 : vector<4x1xf32> to vector<4x256xf32>
    %120 = arith.mulf %119, %104 : vector<4x256xf32>
    %cst_71 = arith.constant dense<0.000000e+00> : vector<256xf32>
    %121 = vector.multi_reduction <add>, %120, %cst_71 [0] : vector<4x256xf32> to vector<256xf32>
    %122 = vector.shape_cast %121 : vector<256xf32> to vector<1x256xf32>
    %c3_72 = arith.constant 3 : index
    %c0_73 = arith.constant 0 : index
    %c0_74 = arith.constant 0 : index
    %123 = vector.load %arg2[%c3_72, %c0_73, %c0_74] : memref<9x4x1xf32, #tpu.memory_space<vmem>>, vector<1x4x1xf32>
    %124 = vector.shape_cast %123 : vector<1x4x1xf32> to vector<4x1xf32>
    %125 = vector.broadcast %124 : vector<4x1xf32> to vector<4x256xf32>
    %126 = arith.mulf %125, %104 : vector<4x256xf32>
    %cst_75 = arith.constant dense<0.000000e+00> : vector<256xf32>
    %127 = vector.multi_reduction <add>, %126, %cst_75 [0] : vector<4x256xf32> to vector<256xf32>
    %128 = vector.shape_cast %127 : vector<256xf32> to vector<1x256xf32>
    %c4_76 = arith.constant 4 : index
    %c0_77 = arith.constant 0 : index
    %c0_78 = arith.constant 0 : index
    %129 = vector.load %arg2[%c4_76, %c0_77, %c0_78] : memref<9x4x1xf32, #tpu.memory_space<vmem>>, vector<1x4x1xf32>
    %130 = vector.shape_cast %129 : vector<1x4x1xf32> to vector<4x1xf32>
    %131 = vector.broadcast %130 : vector<4x1xf32> to vector<4x256xf32>
    %132 = arith.mulf %131, %104 : vector<4x256xf32>
    %cst_79 = arith.constant dense<0.000000e+00> : vector<256xf32>
    %133 = vector.multi_reduction <add>, %132, %cst_79 [0] : vector<4x256xf32> to vector<256xf32>
    %134 = vector.shape_cast %133 : vector<256xf32> to vector<1x256xf32>
    %c5_80 = arith.constant 5 : index
    %c0_81 = arith.constant 0 : index
    %c0_82 = arith.constant 0 : index
    %135 = vector.load %arg2[%c5_80, %c0_81, %c0_82] : memref<9x4x1xf32, #tpu.memory_space<vmem>>, vector<1x4x1xf32>
    %136 = vector.shape_cast %135 : vector<1x4x1xf32> to vector<4x1xf32>
    %137 = vector.broadcast %136 : vector<4x1xf32> to vector<4x256xf32>
    %138 = arith.mulf %137, %104 : vector<4x256xf32>
    %cst_83 = arith.constant dense<0.000000e+00> : vector<256xf32>
    %139 = vector.multi_reduction <add>, %138, %cst_83 [0] : vector<4x256xf32> to vector<256xf32>
    %140 = vector.shape_cast %139 : vector<256xf32> to vector<1x256xf32>
    %c6_84 = arith.constant 6 : index
    %c0_85 = arith.constant 0 : index
    %c0_86 = arith.constant 0 : index
    %141 = vector.load %arg2[%c6_84, %c0_85, %c0_86] : memref<9x4x1xf32, #tpu.memory_space<vmem>>, vector<1x4x1xf32>
    %142 = vector.shape_cast %141 : vector<1x4x1xf32> to vector<4x1xf32>
    %143 = vector.broadcast %142 : vector<4x1xf32> to vector<4x256xf32>
    %144 = arith.mulf %143, %104 : vector<4x256xf32>
    %cst_87 = arith.constant dense<0.000000e+00> : vector<256xf32>
    %145 = vector.multi_reduction <add>, %144, %cst_87 [0] : vector<4x256xf32> to vector<256xf32>
    %146 = vector.shape_cast %145 : vector<256xf32> to vector<1x256xf32>
    %c7_88 = arith.constant 7 : index
    %c0_89 = arith.constant 0 : index
    %c0_90 = arith.constant 0 : index
    %147 = vector.load %arg2[%c7_88, %c0_89, %c0_90] : memref<9x4x1xf32, #tpu.memory_space<vmem>>, vector<1x4x1xf32>
    %148 = vector.shape_cast %147 : vector<1x4x1xf32> to vector<4x1xf32>
    %149 = vector.broadcast %148 : vector<4x1xf32> to vector<4x256xf32>
    %150 = arith.mulf %149, %104 : vector<4x256xf32>
    %cst_91 = arith.constant dense<0.000000e+00> : vector<256xf32>
    %151 = vector.multi_reduction <add>, %150, %cst_91 [0] : vector<4x256xf32> to vector<256xf32>
    %152 = vector.shape_cast %151 : vector<256xf32> to vector<1x256xf32>
    %c8_92 = arith.constant 8 : index
    %c0_93 = arith.constant 0 : index
    %c0_94 = arith.constant 0 : index
    %153 = vector.load %arg2[%c8_92, %c0_93, %c0_94] : memref<9x4x1xf32, #tpu.memory_space<vmem>>, vector<1x4x1xf32>
    %154 = vector.shape_cast %153 : vector<1x4x1xf32> to vector<4x1xf32>
    %155 = vector.broadcast %154 : vector<4x1xf32> to vector<4x256xf32>
    %156 = arith.mulf %155, %104 : vector<4x256xf32>
    %cst_95 = arith.constant dense<0.000000e+00> : vector<256xf32>
    %157 = vector.multi_reduction <add>, %156, %cst_95 [0] : vector<4x256xf32> to vector<256xf32>
    %158 = vector.shape_cast %157 : vector<256xf32> to vector<1x256xf32>
    %c17_i32_96 = arith.constant 17 : i32
    %159 = tpu.dynamic_rotate %110 by %c17_i32_96 dim 1 : vector<1x256xf32>, i32 -> vector<1x256xf32>
    %c0_97 = arith.constant 0 : index
    %c0_98 = arith.constant 0 : index
    %c0_99 = arith.constant 0 : index
    %160 = vector.load %arg3[%c0_97, %c0_98, %c0_99] : memref<9x1x256xf32, #tpu.memory_space<vmem>>, vector<1x1x256xf32>
    %161 = vector.shape_cast %160 : vector<1x1x256xf32> to vector<1x256xf32>
    %162 = arith.mulf %159, %161 : vector<1x256xf32>
    %c16_i32_100 = arith.constant 16 : i32
    %163 = tpu.dynamic_rotate %116 by %c16_i32_100 dim 1 : vector<1x256xf32>, i32 -> vector<1x256xf32>
    %c1_101 = arith.constant 1 : index
    %c0_102 = arith.constant 0 : index
    %c0_103 = arith.constant 0 : index
    %164 = vector.load %arg3[%c1_101, %c0_102, %c0_103] : memref<9x1x256xf32, #tpu.memory_space<vmem>>, vector<1x1x256xf32>
    %165 = vector.shape_cast %164 : vector<1x1x256xf32> to vector<1x256xf32>
    %166 = arith.mulf %163, %165 : vector<1x256xf32>
    %c15_i32_104 = arith.constant 15 : i32
    %167 = tpu.dynamic_rotate %122 by %c15_i32_104 dim 1 : vector<1x256xf32>, i32 -> vector<1x256xf32>
    %c2_105 = arith.constant 2 : index
    %c0_106 = arith.constant 0 : index
    %c0_107 = arith.constant 0 : index
    %168 = vector.load %arg3[%c2_105, %c0_106, %c0_107] : memref<9x1x256xf32, #tpu.memory_space<vmem>>, vector<1x1x256xf32>
    %169 = vector.shape_cast %168 : vector<1x1x256xf32> to vector<1x256xf32>
    %170 = arith.mulf %167, %169 : vector<1x256xf32>
    %c1_i32_108 = arith.constant 1 : i32
    %171 = tpu.dynamic_rotate %128 by %c1_i32_108 dim 1 : vector<1x256xf32>, i32 -> vector<1x256xf32>
    %c3_109 = arith.constant 3 : index
    %c0_110 = arith.constant 0 : index
    %c0_111 = arith.constant 0 : index
    %172 = vector.load %arg3[%c3_109, %c0_110, %c0_111] : memref<9x1x256xf32, #tpu.memory_space<vmem>>, vector<1x1x256xf32>
    %173 = vector.shape_cast %172 : vector<1x1x256xf32> to vector<1x256xf32>
    %174 = arith.mulf %171, %173 : vector<1x256xf32>
    %c255_i32_112 = arith.constant 255 : i32
    %175 = tpu.dynamic_rotate %140 by %c255_i32_112 dim 1 : vector<1x256xf32>, i32 -> vector<1x256xf32>
    %c5_113 = arith.constant 5 : index
    %c0_114 = arith.constant 0 : index
    %c0_115 = arith.constant 0 : index
    %176 = vector.load %arg3[%c5_113, %c0_114, %c0_115] : memref<9x1x256xf32, #tpu.memory_space<vmem>>, vector<1x1x256xf32>
    %177 = vector.shape_cast %176 : vector<1x1x256xf32> to vector<1x256xf32>
    %178 = arith.mulf %175, %177 : vector<1x256xf32>
    %c241_i32_116 = arith.constant 241 : i32
    %179 = tpu.dynamic_rotate %146 by %c241_i32_116 dim 1 : vector<1x256xf32>, i32 -> vector<1x256xf32>
    %c6_117 = arith.constant 6 : index
    %c0_118 = arith.constant 0 : index
    %c0_119 = arith.constant 0 : index
    %180 = vector.load %arg3[%c6_117, %c0_118, %c0_119] : memref<9x1x256xf32, #tpu.memory_space<vmem>>, vector<1x1x256xf32>
    %181 = vector.shape_cast %180 : vector<1x1x256xf32> to vector<1x256xf32>
    %182 = arith.mulf %179, %181 : vector<1x256xf32>
    %c240_i32_120 = arith.constant 240 : i32
    %183 = tpu.dynamic_rotate %152 by %c240_i32_120 dim 1 : vector<1x256xf32>, i32 -> vector<1x256xf32>
    %c7_121 = arith.constant 7 : index
    %c0_122 = arith.constant 0 : index
    %c0_123 = arith.constant 0 : index
    %184 = vector.load %arg3[%c7_121, %c0_122, %c0_123] : memref<9x1x256xf32, #tpu.memory_space<vmem>>, vector<1x1x256xf32>
    %185 = vector.shape_cast %184 : vector<1x1x256xf32> to vector<1x256xf32>
    %186 = arith.mulf %183, %185 : vector<1x256xf32>
    %c239_i32_124 = arith.constant 239 : i32
    %187 = tpu.dynamic_rotate %158 by %c239_i32_124 dim 1 : vector<1x256xf32>, i32 -> vector<1x256xf32>
    %c8_125 = arith.constant 8 : index
    %c0_126 = arith.constant 0 : index
    %c0_127 = arith.constant 0 : index
    %188 = vector.load %arg3[%c8_125, %c0_126, %c0_127] : memref<9x1x256xf32, #tpu.memory_space<vmem>>, vector<1x1x256xf32>
    %189 = vector.shape_cast %188 : vector<1x1x256xf32> to vector<1x256xf32>
    %190 = arith.mulf %187, %189 : vector<1x256xf32>
    %191 = arith.addf %162, %166 : vector<1x256xf32>
    %192 = arith.addf %170, %174 : vector<1x256xf32>
    %193 = arith.addf %134, %178 : vector<1x256xf32>
    %194 = arith.addf %182, %186 : vector<1x256xf32>
    %195 = arith.addf %191, %192 : vector<1x256xf32>
    %196 = arith.addf %193, %194 : vector<1x256xf32>
    %197 = arith.addf %195, %196 : vector<1x256xf32>
    %198 = arith.addf %197, %190 : vector<1x256xf32>
    %cst_128 = arith.constant 0.000000e+00 : f32
    %199 = vector.broadcast %cst_128 : f32 to vector<1x256xf32>
    %200 = arith.subf %199, %198 : vector<1x256xf32>
    %201 = math.exp %200 : vector<1x256xf32>
    %cst_129 = arith.constant 1.000000e+00 : f32
    %202 = vector.broadcast %cst_129 : f32 to vector<1x256xf32>
    %203 = arith.addf %202, %201 : vector<1x256xf32>
    %204 = tpu.reciprocal %203 : vector<1x256xf32> -> vector<1x256xf32>
    %c1_130 = arith.constant 1 : index
    %c0_131 = arith.constant 0 : index
    %205 = vector.load %arg4[%c1_130, %c0_131] : memref<2x256xf32, #tpu.memory_space<vmem>>, vector<1x256xf32>
    tpu.vector_store %arg4[%c1_130, %c0_131], %204 {strides = array<i32>} : memref<2x256xf32, #tpu.memory_space<vmem>>, vector<1x256xf32>,
    return
  }
  func.func @transform_0(%arg0: i32) -> (i32, i32, i32) {
    %c0_i32 = arith.constant 0 : i32
    %c0_i32_0 = arith.constant 0 : i32
    %c0_i32_1 = arith.constant 0 : i32
    return %arg0, %c0_i32, %c0_i32_0 : i32, i32, i32
  }
  func.func @transform_1(%arg0: i32) -> (i32, i32, i32) {
    %c0_i32 = arith.constant 0 : i32
    %c0_i32_0 = arith.constant 0 : i32
    %c0_i32_1 = arith.constant 0 : i32
    %c0_i32_2 = arith.constant 0 : i32
    return %c0_i32, %c0_i32_0, %c0_i32_1 : i32, i32, i32
  }
  func.func @transform_2(%arg0: i32) -> (i32, i32, i32) {
    %c0_i32 = arith.constant 0 : i32
    %c0_i32_0 = arith.constant 0 : i32
    %c0_i32_1 = arith.constant 0 : i32
    %c0_i32_2 = arith.constant 0 : i32
    return %c0_i32, %c0_i32_0, %c0_i32_1 : i32, i32, i32
  }
  func.func @transform_3(%arg0: i32) -> (i32, i32) {
    %c0_i32 = arith.constant 0 : i32
    %c0_i32_0 = arith.constant 0 : i32
    return %arg0, %c0_i32 : i32, i32
  }
}

</mosaic_0001>

<bundles_post_ra>
// kernel: regression_map_forward.1
= control target key start
LH: loop header
LB: loop body
LE: loop exit
PB: predicated region body
PF: predicated region fallthrough
CT: control target
= control target key end

     0   :  { %v926_v0 = vmov 0   ;;  %vm26_vm0 = vcmask 1043456   ;;  %s928_s24 = smov 16   ;;  %s929_s25 = smov 15   ;;  %s1576_s1 = inlined_call_operand.vmem [shape: f32[9,4,1], index: 1, kind: input, shape index: {}]   ;;  %s1577_s0 = inlined_call_operand.vmem [shape: f32[2,4,256], index: 0, kind: input, shape index: {}]   ;;  %s1578_s2 = inlined_call_operand.vmem [shape: f32[9,1,256], index: 2, kind: input, shape index: {}]   ;;  %s1579_s3 = inlined_call_operand.vmem [shape: f32[2,256], index: 3, kind: output, shape index: {}]  }
   0x1   :  { %907 = vset.pattern.permute.xlu1 %v926_v0  ;;  %906 = vset.pattern.permute.xlu0 %v926_v0  ;;  %v865_v1 = vld [vmem:[%s1576_s1 + $0x8] sm:$0xf]  ;;  %v15_v2 = vld [vmem:[%s1576_s1] sm:$0xf]  ;;  %v866_v3 = vld [vmem:[%s1576_s1 + $0xc] sm:$0xf] }
   0x2   :  { %68 = vperm.xlu1 %907, %v865_v1   ;;  %18 = vperm.xlu0 %906, %v15_v2   ;;  %v864_v4 = vld [vmem:[%s1576_s1 + $0x4] sm:$0xf]  ;;  %v869_v5 = vld [vmem:[%s1576_s1 + $0x18] sm:$0xf]  ;;  %v868_v6 = vld [vmem:[%s1576_s1 + $0x14] sm:$0xf] }
   0x3   :  { %v453_v7 = vld [vmem:[%s1576_s1] sm:$0xf]  ;;  %v870_v8 = vld [vmem:[%s1576_s1 + $0x1c] sm:$0xf]  ;;  %v881_v9 = vld [vmem:[%s1576_s1 + $0x8] sm:$0xf] }
   0x4   :  { %v880_v10 = vld [vmem:[%s1576_s1 + $0x4] sm:$0xf]  ;;  %v884_v11 = vld [vmem:[%s1576_s1 + $0x14] sm:$0xf]  ;;  %v882_v12 = vld [vmem:[%s1576_s1 + $0xc] sm:$0xf] }
   0x5   :  { %v886_v13 = vld [vmem:[%s1576_s1 + $0x1c] sm:$0xf]  ;;  %v885_v14 = vld [vmem:[%s1576_s1 + $0x18] sm:$0xf]  ;;  %v887_v15 = vld [vmem:[%s1576_s1 + $0x20] sm:$0xf] }
   0x6   :  { %91 = vperm.xlu1 %907, %v866_v3   ;;  %45 = vperm.xlu0 %906, %v864_v4   ;;  %v871_v16 = vld [vmem:[%s1576_s1 + $0x20] sm:$0xf]  ;;  %v883_v17 = vld [vmem:[%s1576_s1 + $0x10] sm:$0xf]  ;;  %v1041_v60 = vld [vmem:[%s1577_s0 + $0x8] sm:$0xff]  ;;  %s930_s26 = smov 1  }
   0x7   :  { %v867_v18 = vld [vmem:[%s1576_s1 + $0x10] sm:$0xf]  ;;  %v1013_v19 = vld [vmem:[%s1577_s0] sm:$0xff]  ;;  %s927_s0 = smov 17   ;;  %s931_s27 = smov 127  }
   0x8   :  { %v1017_v22 = vcombine.high %v1013_v19, %v1013_v19  ;;  %s932_s28 = smov 113   ;;  %s933_s29 = smov 112  }
   0x9   :  { %s934_s30 = smov 111  }
   0xa   :  { %160 = vperm.xlu1 %907, %v869_v5   ;;  %137 = vperm.xlu0 %906, %v868_v6  }
   0xe   :  { %456 = vperm.xlu1 %907, %v453_v7   ;;  %183 = vperm.xlu0 %906, %v870_v8  }
  0x12   :  { %503 = vperm.xlu1 %907, %v881_v9   ;;  %481 = vperm.xlu0 %906, %v880_v10   ;;  %v1052_v10 = vcombine.high %v1041_v60, %v1041_v60 }
  0x16   :  { %569 = vperm.xlu1 %907, %v884_v11   ;;  %525 = vperm.xlu0 %906, %v882_v12  }
  0x1a   :  { %613 = vperm.xlu1 %907, %v886_v13   ;;  %591 = vperm.xlu0 %906, %v885_v14  }
  0x1e   :  { %635 = vperm.xlu1 %907, %v887_v15   ;;  %206 = vperm.xlu0 %906, %v871_v16  }
  0x22   :  { %547 = vperm.xlu1 %907, %v883_v17   ;;  %114 = vperm.xlu0 %906, %v867_v18  }
  0x81   :  { %v69_v20 = vpop.permute.xlu1 %68  ;;  %v19_v21 = vpop.permute.xlu0 %18 }
  0x82   :  { %v24_v25 = vmul.f32 %v19_v21, %v1013_v19  ;;  %v25_v26 = vmul.f32 %v1017_v22, %v19_v21  ;;  %v71_v33 = vmul.f32 %v69_v20, %v1013_v19  ;;  %v72_v37 = vmul.f32 %v69_v20, %v1017_v22 }
  0x84   :  { %v27_v29 = vsel %vm26_vm0, %v24_v25, 0.0  ;;  %v34_v30 = vsel %vm26_vm0, %v25_v26, 0.0  ;;  %v73_v41 = vsel %vm26_vm0, %v71_v33, 0.0  ;;  %v80_v44 = vsel %vm26_vm0, %v72_v37, 0.0 }
  0x85   :  { %v92_v23 = vpop.permute.xlu1 %91  ;;  %v46_v24 = vpop.permute.xlu0 %45  ;;  %v28_v34 = vrot.slane %v27_v29, 4  ;;  %v35_v35 = vrot.slane %v34_v30, 4  ;;  %v74_v48 = vrot.slane %v73_v41, 4  ;;  %v81_v50 = vrot.slane %v80_v44, 4 }
  0x86   :  { %v48_v31 = vmul.f32 %v46_v24, %v1013_v19  ;;  %v49_v32 = vmul.f32 %v46_v24, %v1017_v22  ;;  %v94_v49 = vmul.f32 %v92_v23, %v1013_v19  ;;  %v95_v54 = vmul.f32 %v92_v23, %v1017_v22 }
  0x87   :  { %v29_v42 = vadd.f32 %v28_v34, %v27_v29  ;;  %v36_v43 = vadd.f32 %v35_v35, %v34_v30  ;;  %v75_v57 = vadd.f32 %v74_v48, %v73_v41  ;;  %v82_v59 = vadd.f32 %v81_v50, %v80_v44 }
  0x88   :  { %v50_v38 = vsel %vm26_vm0, %v48_v31, 0.0  ;;  %v57_v39 = vsel %vm26_vm0, %v49_v32, 0.0  ;;  %v96_v58 = vsel %vm26_vm0, %v94_v49, 0.0  ;;  %v103_v0 = vsel %vm26_vm0, %v95_v54, 0.0 }
  0x89   :  { %v161_v27 = vpop.permute.xlu1 %160  ;;  %v138_v28 = vpop.permute.xlu0 %137  ;;  %v51_v45 = vrot.slane %v50_v38, 4  ;;  %v58_v46 = vrot.slane %v57_v39, 4  ;;  %v30_v51 = vrot.slane %v29_v42, 2  ;;  %v37_v52 = vrot.slane %v36_v43, 2 }
  0x8a   :  { %v163_v3 = vmul.f32 %v161_v27, %v1013_v19  ;;  %v97_v4 = vrot.slane %v96_v58, 4  ;;  %v164_v5 = vmul.f32 %v161_v27, %v1017_v22  ;;  %v76_v9 = vrot.slane %v75_v57, 2 }
  0x8b   :  { %v52_v55 = vadd.f32 %v51_v45, %v50_v38  ;;  %v59_v56 = vadd.f32 %v58_v46, %v57_v39  ;;  %v31_v61 = vadd.f32 %v30_v51, %v29_v42  ;;  %v38_v62 = vadd.f32 %v37_v52, %v36_v43 }
  0x8c   :  { %v104_v11 = vrot.slane %v103_v0, 4  ;;  %v140_v12 = vmul.f32 %v138_v28, %v1013_v19  ;;  %v165_v15 = vsel %vm26_vm0, %v163_v3, 0.0  ;;  %v141_v16 = vmul.f32 %v138_v28, %v1017_v22 }
  0x8d   :  { %v457_v36 = vpop.permute.xlu1 %456  ;;  %v184_v40 = vpop.permute.xlu0 %183  ;;  %v53_v1 = vrot.slane %v52_v55, 2  ;;  %v60_v2 = vrot.slane %v59_v56, 2  ;;  %v32_v6 = vrot.slane %v31_v61, 1  ;;  %v39_v7 = vrot.slane %v38_v62, 1 }
  0x8e   :  { %v83_v20 = vrot.slane %v82_v59, 2  ;;  %v98_v21 = vadd.f32 %v97_v4, %v96_v58  ;;  %v172_v23 = vsel %vm26_vm0, %v164_v5, 0.0  ;;  %v462_v24 = vmul.f32 %v1041_v60, %v457_v36 }
  0x8f   :  { %v33_v13 = vadd.f32 %v32_v6, %v31_v61  ;;  %v40_v14 = vadd.f32 %v39_v7, %v38_v62  ;;  %v54_v17 = vadd.f32 %v53_v1, %v52_v55  ;;  %v61_v18 = vadd.f32 %v60_v2, %v59_v56 }
  0x90   :  { %v463_v26 = vmul.f32 %v1052_v10, %v457_v36  ;;  %v186_v27 = vmul.f32 %v184_v40, %v1013_v19  ;;  %v105_v30 = vadd.f32 %v104_v11, %v103_v0  ;;  %v166_v31 = vrot.slane %v165_v15, 4 }
  0x91   :  { %v1031_v47 = vpop.permute.xlu1 %503  ;;  %v1034_v53 = vpop.permute.xlu0 %481  ;;  %225 = vrot.lane.b32.xlu0 %v33_v13, %s927_s0  ;;  %227 = vrot.lane.b32.xlu1 %v40_v14, %s927_s0  ;;  %v55_v28 = vrot.slane %v54_v17, 1  ;;  %v62_v29 = vrot.slane %v61_v18, 1  ;;  %v142_v32 = vsel %vm26_vm0, %v140_v12, 0.0  ;;  %v149_v34 = vsel %vm26_vm0, %v141_v16, 0.0 }
  0x92   :  { %v187_v35 = vmul.f32 %v184_v40, %v1017_v22  ;;  %v99_v39 = vrot.slane %v98_v21, 2  ;;  %v173_v41 = vrot.slane %v172_v23, 4  ;;  %v464_v36 = vsel %vm26_vm0, %v462_v24, 0.0 }
  0x93   :  { %v56_v37 = vadd.f32 %v55_v28, %v54_v17  ;;  %v63_v38 = vadd.f32 %v62_v29, %v61_v18  ;;  %v471_v42 = vsel %vm26_vm0, %v463_v26, 0.0  ;;  %v188_v43 = vsel %vm26_vm0, %v186_v27, 0.0 }
  0x94   :  { %v77_v44 = vadd.f32 %v76_v9, %v75_v57  ;;  %v84_v45 = vadd.f32 %v83_v20, %v82_v59  ;;  %v106_v46 = vrot.slane %v105_v30, 2  ;;  %v1075_v48 = vadd.f32 %v166_v31, %v165_v15 }
  0x95   :  { %v1043_v63 = vpop.permute.xlu1 %569  ;;  %v1048_v8 = vpop.permute.xlu0 %525  ;;  %248 = vrot.lane.b32.xlu0 %v56_v37, %s928_s24  ;;  %250 = vrot.lane.b32.xlu1 %v63_v38, %s928_s24  ;;  %v143_v40 = vrot.slane %v142_v32, 4  ;;  %v150_v49 = vrot.slane %v149_v34, 4  ;;  %v465_v51 = vrot.slane %v464_v36, 4  ;;  %v195_v52 = vsel %vm26_vm0, %v187_v35, 0.0 }
  0x96   :  { %v78_v54 = vrot.slane %v77_v44, 1  ;;  %v85_v55 = vrot.slane %v84_v45, 1  ;;  %v472_v56 = vrot.slane %v471_v42, 4  ;;  %v189_v58 = vrot.slane %v188_v43, 4 }
  0x97   :  { %v506_v61 = vmul.f32 %v1041_v60, %v1031_v47  ;;  %v484_v57 = vmul.f32 %v1041_v60, %v1034_v53  ;;  %v174_v62 = vadd.f32 %v173_v41, %v172_v23  ;;  %v485_v0 = vmul.f32 %v1034_v53, %v1052_v10 }
  0x98   :  { %v79_v1 = vadd.f32 %v78_v54, %v77_v44  ;;  %v86_v2 = vadd.f32 %v85_v55, %v84_v45  ;;  %v144_v3 = vadd.f32 %v143_v40, %v142_v32  ;;  %v151_v4 = vadd.f32 %v150_v49, %v149_v34 }
  0x99   :  { %v1061_v25 = vpop.permute.xlu1 %613  ;;  %v1066_v33 = vpop.permute.xlu0 %591  ;;  %v196_v5 = vrot.slane %v195_v52, 4  ;;  %v507_v6 = vmul.f32 %v1031_v47, %v1052_v10  ;;  %v168_v7 = vrot.slane %v1075_v48, 2  ;;  %v1091_v9 = vadd.f32 %v465_v51, %v464_v36 }
  0x9a   :  { %270 = vrot.lane.b32.xlu0 %v79_v1, %s929_s25  ;;  %272 = vrot.lane.b32.xlu1 %v86_v2, %s929_s25  ;;  %v100_v11 = vadd.f32 %v99_v39, %v98_v21  ;;  %v1097_v12 = vadd.f32 %v472_v56, %v471_v42  ;;  %v190_v13 = vadd.f32 %v189_v58, %v188_v43  ;;  %v508_v14 = vsel %vm26_vm0, %v506_v61, 0.0 }
  0x9b   :  { %v486_v47 = vsel %vm26_vm0, %v484_v57, 0.0  ;;  %v493_v16 = vsel %vm26_vm0, %v485_v0, 0.0  ;;  %v107_v20 = vadd.f32 %v106_v46, %v105_v30  ;;  %v175_v23 = vrot.slane %v174_v62, 2 }
  0x9c   :  { %v101_v18 = vrot.slane %v100_v11, 1  ;;  %v145_v24 = vrot.slane %v144_v3, 2  ;;  %v152_v26 = vrot.slane %v151_v4, 2  ;;  %v197_v21 = vadd.f32 %v196_v5, %v195_v52 }
  0x9d   :  { %v1077_v50 = vpop.permute.xlu1 %635  ;;  %v1084_v59 = vpop.permute.xlu0 %206  ;;  %v515_v27 = vsel %vm26_vm0, %v507_v6, 0.0  ;;  %v108_v29 = vrot.slane %v107_v20, 1  ;;  %v467_v32 = vrot.slane %v1091_v9, 2  ;;  %v509_v34 = vrot.slane %v508_v14, 4 }
  0x9e   :  { %v210_v53 = vmul.f32 %v1084_v59, %v1017_v22  ;;  %v102_v28 = vadd.f32 %v101_v18, %v100_v11  ;;  %v487_v35 = vrot.slane %v486_v47, 4  ;;  %v494_v37 = vrot.slane %v493_v16, 4 }
  0x9f   :  { %v474_v30 = vrot.slane %v1097_v12, 2  ;;  %v191_v39 = vrot.slane %v190_v13, 2  ;;  %v109_v41 = vadd.f32 %v108_v29, %v107_v20  ;;  %v516_v42 = vrot.slane %v515_v27, 4 }
  0xa0   :  { %v1105_v17 = vsel %vm26_vm0, %v210_v53, 0.0  ;;  %292 = vrot.lane.b32.xlu0 %v102_v28, %s930_s26  ;;  %v572_v43 = vmul.f32 %v1041_v60, %v1043_v63  ;;  %v528_v44 = vmul.f32 %v1041_v60, %v1048_v8  ;;  %v529_v45 = vmul.f32 %v1048_v8, %v1052_v10 }
  0xa1   :  { %v1101_v15 = vpop.permute.xlu1 %547  ;;  %v1111_v38 = vpop.permute.xlu0 %114  ;;  %v573_v46 = vmul.f32 %v1043_v63, %v1052_v10  ;;  %294 = vrot.lane.b32.xlu1 %v109_v41, %s930_s26  ;;  %v146_v49 = vadd.f32 %v145_v24, %v144_v3  ;;  %v153_v51 = vadd.f32 %v152_v26, %v151_v4  ;;  %v1129_v52 = vadd.f32 %v509_v34, %v508_v14 }
  0xa2   :  { %v551_v31 = vmul.f32 %v1101_v15, %v1052_v10  ;;  %v118_v40 = vmul.f32 %v1111_v38, %v1017_v22  ;;  %v488_v54 = vadd.f32 %v487_v35, %v486_v47  ;;  %v495_v55 = vadd.f32 %v494_v37, %v493_v16 }
  0xa3   :  { %v169_v56 = vadd.f32 %v168_v7, %v1075_v48  ;;  %v147_v8 = vrot.slane %v146_v49, 1  ;;  %v154_v61 = vrot.slane %v153_v51, 1  ;;  %v176_v57 = vadd.f32 %v175_v23, %v174_v62 }
  0xa4   :  { %v1116_v36 = vsel %vm26_vm0, %v551_v31, 0.0  ;;  %v1133_v58 = vsel %vm26_vm0, %v118_v40, 0.0  ;;  %v198_v63 = vrot.slane %v197_v21, 2  ;;  %v517_v0 = vadd.f32 %v516_v42, %v515_v27 }
  0xa5   :  { %v530_v1 = vsel %vm26_vm0, %v528_v44, 0.0  ;;  %v537_v22 = vsel %vm26_vm0, %v529_v45, 0.0  ;;  %v148_v2 = vadd.f32 %v147_v8, %v146_v49  ;;  %v155_v3 = vadd.f32 %v154_v61, %v153_v51 }
  0xa6   :  { %v170_v4 = vrot.slane %v169_v56, 1  ;;  %v177_v5 = vrot.slane %v176_v57, 1  ;;  %v511_v6 = vrot.slane %v1129_v52, 2  ;;  %v489_v53 = vrot.slane %v488_v54, 2 }
  0xa7   :  { %v574_v48 = vsel %vm26_vm0, %v572_v43, 0.0  ;;  %v581_v7 = vsel %vm26_vm0, %v573_v46, 0.0  ;;  %v496_v11 = vrot.slane %v495_v55, 2  ;;  %v531_v14 = vrot.slane %v530_v1, 4  ;;  %314 = vrot.lane.b32.xlu0 %v148_v2, %s931_s27  ;;  %316 = vrot.lane.b32.xlu1 %v155_v3, %s931_s27 }
  0xa8   :  { %v538_v62 = vrot.slane %v537_v22, 4  ;;  %v192_v47 = vadd.f32 %v191_v39, %v190_v13  ;;  %v594_v16 = vmul.f32 %v1041_v60, %v1066_v33  ;;  %v595_v18 = vmul.f32 %v1066_v33, %v1052_v10 }
  0xa9   :  { %v171_v20 = vadd.f32 %v170_v4, %v169_v56  ;;  %v199_v23 = vadd.f32 %v198_v63, %v197_v21  ;;  %v178_v24 = vadd.f32 %v177_v5, %v176_v57  ;;  %v468_v27 = vadd.f32 %v467_v32, %v1091_v9 }
  0xaa   :  { %v193_v26 = vrot.slane %v192_v47, 1  ;;  %v475_v28 = vadd.f32 %v474_v30, %v1097_v12  ;;  %v575_v29 = vrot.slane %v574_v48, 4  ;;  %v582_v31 = vrot.slane %v581_v7, 4 }
  0xab   :  { %v616_v34 = vmul.f32 %v1041_v60, %v1061_v25  ;;  %v200_v13 = vrot.slane %v199_v23, 1  ;;  %v518_v35 = vrot.slane %v517_v0, 2  ;;  %v532_v37 = vadd.f32 %v531_v14, %v530_v1  ;;  %336 = vrot.lane.b32.xlu0 %v171_v20, %s932_s28  ;;  %338 = vrot.lane.b32.xlu1 %v178_v24, %s932_s28 }
  0xac   :  { %v539_v39 = vadd.f32 %v538_v62, %v537_v22  ;;  %v617_v33 = vmul.f32 %v1061_v25, %v1052_v10  ;;  %v596_v9 = vsel %vm26_vm0, %v594_v16, 0.0  ;;  %v603_v12 = vsel %vm26_vm0, %v595_v18, 0.0 }
  0xad   :  { %v490_v21 = vadd.f32 %v489_v53, %v488_v54  ;;  %v497_v32 = vadd.f32 %v496_v11, %v495_v55  ;;  %v194_v30 = vadd.f32 %v193_v26, %v192_v47  ;;  %v201_v41 = vadd.f32 %v200_v13, %v199_v23 }
  0xae   :  { %v469_v42 = vrot.slane %v468_v27, 1  ;;  %v476_v43 = vrot.slane %v475_v28, 1  ;;  %v576_v44 = vadd.f32 %v575_v29, %v574_v48  ;;  %v583_v45 = vadd.f32 %v582_v31, %v581_v7 }
  0xaf   :  { %v618_v46 = vsel %vm26_vm0, %v616_v34, 0.0  ;;  %v533_v25 = vrot.slane %v532_v37, 2  ;;  %v625_v40 = vsel %vm26_vm0, %v617_v33, 0.0  ;;  %v597_v49 = vrot.slane %v596_v9, 4  ;;  %358 = vrot.lane.b32.xlu0 %v194_v30, %s933_s29  ;;  %360 = vrot.lane.b32.xlu1 %v201_v41, %s933_s29 }
  0xb0   :  { %v604_v51 = vrot.slane %v603_v12, 4  ;;  %v540_v54 = vrot.slane %v539_v39, 2  ;;  %v209_v55 = vmul.f32 %v1084_v59, %v1013_v19  ;;  %v491_v56 = vrot.slane %v490_v21, 1 }
  0xb1   :  { %v512_v8 = vadd.f32 %v511_v6, %v1129_v52  ;;  %v470_v61 = vadd.f32 %v469_v42, %v468_v27  ;;  %v477_v57 = vadd.f32 %v476_v43, %v475_v28  ;;  %v498_v63 = vrot.slane %v497_v32, 1 }
  0xb2   :  { %v519_v1 = vadd.f32 %v518_v35, %v517_v0  ;;  %v619_v22 = vrot.slane %v618_v46, 4  ;;  %v626_v2 = vrot.slane %v625_v40, 4  ;;  %v638_v3 = vmul.f32 %v1041_v60, %v1077_v50 }
  0xb3   :  { %v577_v4 = vrot.slane %v576_v44, 2  ;;  %v598_v5 = vadd.f32 %v597_v49, %v596_v9  ;;  %v605_v53 = vadd.f32 %v604_v51, %v603_v12  ;;  %v639_v48 = vmul.f32 %v1077_v50, %v1052_v10  ;;  %654 = vrot.lane.b32.xlu0 %v470_v61, %s927_s0  ;;  %656 = vrot.lane.b32.xlu1 %v477_v57, %s927_s0 }
  0xb4   :  { %v584_v59 = vrot.slane %v583_v45, 2  ;;  %v211_v52 = vsel %vm26_vm0, %v209_v55, 0.0  ;;  %v492_v6 = vadd.f32 %v491_v56, %v490_v21  ;;  %v513_v0 = vrot.slane %v512_v8, 1 }
  0xb5   :  { %v499_v7 = vadd.f32 %v498_v63, %v497_v32  ;;  %v520_v11 = vrot.slane %v519_v1, 1  ;;  %v534_v14 = vadd.f32 %v533_v25, %v532_v37  ;;  %v541_v62 = vadd.f32 %v540_v54, %v539_v39 }
  0xb6   :  { %v620_v47 = vadd.f32 %v619_v22, %v618_v46  ;;  %v627_v16 = vadd.f32 %v626_v2, %v625_v40  ;;  %v599_v18 = vrot.slane %v598_v5, 2  ;;  %v606_v20 = vrot.slane %v605_v53, 2 }
  0xb7   :  { %v640_v23 = vsel %vm26_vm0, %v638_v3, 0.0  ;;  %v647_v10 = vsel %vm26_vm0, %v639_v48, 0.0  ;;  %674 = vrot.lane.b32.xlu0 %v492_v6, %s928_s24  ;;  %676 = vrot.lane.b32.xlu1 %v499_v7, %s928_s24  ;;  %v212_v50 = vrot.slane %v211_v52, 4  ;;  %v219_v24 = vrot.slane %v1105_v17, 4 }
  0xb8   :  { %v514_v26 = vadd.f32 %v513_v0, %v512_v8  ;;  %v578_v27 = vadd.f32 %v577_v4, %v576_v44  ;;  %v521_v28 = vadd.f32 %v520_v11, %v519_v1  ;;  %v535_v29 = vrot.slane %v534_v14, 1 }
  0xb9   :  { %v542_v31 = vrot.slane %v541_v62, 1  ;;  %v585_v34 = vadd.f32 %v584_v59, %v583_v45  ;;  %v621_v13 = vrot.slane %v620_v47, 2  ;;  %v628_v35 = vrot.slane %v627_v16, 2 }
  0xba   :  { %v641_v37 = vrot.slane %v640_v23, 4  ;;  %v648_v39 = vrot.slane %v647_v10, 4  ;;  %v213_v33 = vadd.f32 %v212_v50, %v211_v52  ;;  %v220_v9 = vadd.f32 %v219_v24, %v1105_v17 }
  0xbb   :  { %694 = vrot.lane.b32.xlu0 %v514_v26, %s929_s25  ;;  %696 = vrot.lane.b32.xlu1 %v521_v28, %s929_s25  ;;  %v600_v12 = vadd.f32 %v599_v18, %v598_v5  ;;  %v607_v21 = vadd.f32 %v606_v20, %v605_v53  ;;  %v536_v32 = vadd.f32 %v535_v29, %v534_v14  ;;  %v579_v41 = vrot.slane %v578_v27, 1 }
  0xbc   :  { %v543_v30 = vadd.f32 %v542_v31, %v541_v62  ;;  %v586_v42 = vrot.slane %v585_v34, 1  ;;  %v642_v43 = vadd.f32 %v641_v37, %v640_v23  ;;  %v649_v44 = vadd.f32 %v648_v39, %v647_v10 }
  0xbd   :  { %v214_v45 = vrot.slane %v213_v33, 2  ;;  %v221_v46 = vrot.slane %v220_v9, 2  ;;  %v601_v25 = vrot.slane %v600_v12, 1  ;;  %v622_v40 = vadd.f32 %v621_v13, %v620_v47 }
  0xbe   :  { %v580_v49 = vadd.f32 %v579_v41, %v578_v27  ;;  %v587_v51 = vadd.f32 %v586_v42, %v585_v34  ;;  %v608_v54 = vrot.slane %v607_v21, 1  ;;  %v629_v17 = vadd.f32 %v628_v35, %v627_v16 }
  0xbf   :  { %714 = vrot.lane.b32.xlu0 %v536_v32, %s930_s26  ;;  %716 = vrot.lane.b32.xlu1 %v543_v30, %s930_s26  ;;  %v643_v55 = vrot.slane %v642_v43, 2  ;;  %v650_v56 = vrot.slane %v649_v44, 2  ;;  %v602_v8 = vadd.f32 %v601_v25, %v600_v12  ;;  %v623_v61 = vrot.slane %v622_v40, 1  ;;  %v1244_v25 = vld [vmem:[%s1578_s2 + $0x2] sm:$0x3] }
  0xc0   :  { %v609_v57 = vadd.f32 %v608_v54, %v607_v21  ;;  %v630_v63 = vrot.slane %v629_v17, 1  ;;  %v215_v1 = vadd.f32 %v214_v45, %v213_v33  ;;  %v222_v22 = vadd.f32 %v221_v46, %v220_v9 }
  0xc1   :  { %v624_v2 = vadd.f32 %v623_v61, %v622_v40  ;;  %v644_v3 = vadd.f32 %v643_v55, %v642_v43  ;;  %v651_v48 = vadd.f32 %v650_v56, %v649_v44  ;;  %v117_v18 = vmul.f32 %v1111_v38, %v1013_v19  ;;  %v1249_v40 = vld [vmem:[%s1578_s2 + $0x4] sm:$0x3] }
  0xc2   :  { %v631_v4 = vadd.f32 %v630_v63, %v629_v17  ;;  %v216_v5 = vrot.slane %v215_v1, 1  ;;  %v223_v53 = vrot.slane %v222_v22, 1  ;;  %v550_v50 = vmul.f32 %v1041_v60, %v1101_v15  ;;  %v1255_v17 = vld [vmem:[%s1578_s2 + $0x6] sm:$0x3] }
  0xc3   :  { %734 = vrot.lane.b32.xlu0 %v580_v49, %s931_s27  ;;  %736 = vrot.lane.b32.xlu1 %v587_v51, %s931_s27  ;;  %v645_v6 = vrot.slane %v644_v3, 1  ;;  %v652_v0 = vrot.slane %v651_v48, 1  ;;  %v119_v10 = vsel %vm26_vm0, %v117_v18, 0.0  ;;  %v127_v29 = vrot.slane %v1133_v58, 4 }
  0xc4   :  { %v217_v59 = vadd.f32 %v216_v5, %v215_v1  ;;  %v224_v52 = vadd.f32 %v223_v53, %v222_v22  ;;  %v120_v24 = vrot.slane %v119_v10, 4  ;;  %v552_v28 = vsel %vm26_vm0, %v550_v50, 0.0  ;;  %v1277_v22 = vld [vmem:[%s1578_s2 + $0xc] sm:$0x3]  ;;  %v1320_v50 = vld [vmem:[%s1578_s2 + $0x4] sm:$0x3] }
  0xc5   :  { %v646_v7 = vadd.f32 %v645_v6, %v644_v3  ;;  %v653_v11 = vadd.f32 %v652_v0, %v651_v48  ;;  %v553_v19 = vrot.slane %v552_v28, 4  ;;  %v560_v38 = vrot.slane %v1116_v36, 4  ;;  %v1304_v0 = vld [vmem:[%s1578_s2] sm:$0x3] }
  0xc6   :  { %v121_v31 = vadd.f32 %v120_v24, %v119_v10  ;;  %v128_v34 = vadd.f32 %v127_v29, %v1133_v58  ;;  %v1580_v13 = vlaneseq  ;;  %v1325_v24 = vld [vmem:[%s1578_s2 + $0x6] sm:$0x3] }
  0xc7   :  { %754 = vrot.lane.b32.xlu0 %v602_v8, %s932_s28  ;;  %756 = vrot.lane.b32.xlu1 %v609_v57, %s932_s28  ;;  %v554_v15 = vadd.f32 %v553_v19, %v552_v28  ;;  %v561_v39 = vadd.f32 %v560_v38, %v1116_v36  ;;  %v1232_v36 = vld [vmem:[%s1578_s2] sm:$0x3]  ;;  %v1264_v8 = vld [vmem:[%s1578_s2 + $0xa] sm:$0x3] }
  0xc8   :  { %v122_v60 = vrot.slane %v121_v31, 2  ;;  %v129_v33 = vrot.slane %v128_v34, 2  ;;  %v1217_v9 = vshrl.u32 %v1580_v13, 7  ;;  %v1227_v43 = vand.u32 127, %v1580_v13 }
  0xc9   :  { %v555_v30 = vrot.slane %v554_v15, 2  ;;  %v562_v58 = vrot.slane %v561_v39, 2 }
  0xca   :  { %v123_v32 = vadd.f32 %v122_v60, %v121_v31  ;;  %v130_v41 = vadd.f32 %v129_v33, %v128_v34  ;;  %v1224_v42 = vsub.s32 0, %v1217_v9  ;;  %v1235_v44 = vsub.s32 1, %v1217_v9  ;;  %v1337_v60 = vld [vmem:[%s1578_s2 + $0xa] sm:$0x3] }
  0xcb   :  { %774 = vrot.lane.b32.xlu0 %v624_v2, %s933_s29  ;;  %776 = vrot.lane.b32.xlu1 %v631_v4, %s933_s29  ;;  %v556_v51 = vadd.f32 %v555_v30, %v554_v15  ;;  %v563_v54 = vadd.f32 %v562_v58, %v561_v39  ;;  %vm252_vm1 = vcmp.lt.s32.totalorder %v1227_v43, 16  ;;  %vm274_vm2 = vcmp.lt.s32.totalorder %v1227_v43, 15  ;;  %v1350_v30 = vld [vmem:[%s1578_s2 + $0xc] sm:$0x3] }
  0xcc   :  { %v124_v49 = vrot.slane %v123_v32, 1  ;;  %v239_v55 = vrot.slane %v1232_v36, %v1224_v42  ;;  %vm296_vm3 = vcmp.lt.s32.totalorder %v1227_v43, 1  ;;  %v131_v56 = vrot.slane %v130_v41, 1 }
  0xcd   :  { %v243_v61 = vrot.slane %v1232_v36, %v1235_v44  ;;  %v261_v57 = vrot.slane %v1244_v25, %v1224_v42  ;;  %v265_v63 = vrot.slane %v1244_v25, %v1235_v44  ;;  %v283_v1 = vrot.slane %v1249_v40, %v1224_v42  ;;  %v1450_v25 = vld [vmem:[%s1578_s2 + $0x10] sm:$0x3] }
  0xce   :  { %vm231_vm4 = vcmp.lt.s32.totalorder %v1227_v43, 17  ;;  %v287_v4 = vrot.slane %v1249_v40, %v1235_v44  ;;  %v305_v5 = vrot.slane %v1255_v17, %v1224_v42  ;;  %v309_v53 = vrot.slane %v1255_v17, %v1235_v44 }
  0xcf   :  { %380 = vrot.lane.b32.xlu0 %v217_v59, %s934_s30  ;;  %382 = vrot.lane.b32.xlu1 %v224_v52, %s934_s30  ;;  %v1290_v48 = vadd.f32 %v124_v49, %v123_v32  ;;  %v877_v59 = vld [vmem:[%s1578_s2 + $0xe] sm:$0x3]  ;;  %vm318_vm5 = vcmp.lt.s32.totalorder %v1227_v43, 127  ;;  %v327_v52 = vrot.slane %v1264_v8, %v1224_v42  ;;  %v331_v6 = vrot.slane %v1264_v8, %v1235_v44 }
  0xd0   :  { %vm340_vm6 = vcmp.lt.s32.totalorder %v1227_v43, 113  ;;  %v349_v18 = vrot.slane %v1277_v22, %v1224_v42  ;;  %v353_v10 = vrot.slane %v1277_v22, %v1235_v44  ;;  %v557_v28 = vrot.slane %v556_v51, 1 }
  0xd1   :  { %vm362_vm7 = vcmp.lt.s32.totalorder %v1227_v43, 112  ;;  %v371_v29 = vrot.slane %v877_v59, %v1224_v42  ;;  %v375_v31 = vrot.slane %v877_v59, %v1235_v44  ;;  %v564_v34 = vrot.slane %v563_v54, 1 }
  0xd2   :  { %v665_v15 = vrot.slane %v1304_v0, %v1224_v42  ;;  %v669_v39 = vrot.slane %v1304_v0, %v1235_v44  ;;  %v725_v49 = vrot.slane %v1325_v24, %v1224_v42  ;;  %v729_v17 = vrot.slane %v1325_v24, %v1235_v44 }
  0xd3   :  { %794 = vrot.lane.b32.xlu0 %v646_v7, %s934_s30  ;;  %796 = vrot.lane.b32.xlu1 %v653_v11, %s934_s30  ;;  %v1309_v7 = vld [vmem:[%s1578_s2 + $0x2] sm:$0x3]  ;;  %v1311_v11 = vadd.f32 %v131_v56, %v130_v41  ;;  %v1368_v22 = vadd.f32 %v557_v28, %v556_v51  ;;  %v745_v59 = vrot.slane %v1337_v60, %v1224_v42  ;;  %vm384_vm8 = vcmp.lt.s32.totalorder %v1227_v43, 111 }
  0xd4   :  { %v1376_v58 = vadd.f32 %v564_v34, %v563_v54  ;;  %v749_v32 = vrot.slane %v1337_v60, %v1235_v44  ;;  %v393_v36 = vrot.slane %v1450_v25, %v1224_v42  ;;  %v1585_v60 = vrot.slane %v1350_v30, %v1224_v42 }
 0x103   :  { %v1186_v14 = vpop.permute.xlu0 %225  ;;  %v1188_v62 = vpop.permute.xlu1 %227 }
 0x107   :  { %v1190_v47 = vpop.permute.xlu0 %248  ;;  %v1192_v16 = vpop.permute.xlu1 %250 }
 0x108   :  { %v254_v51 = vsel %vm252_vm1, %v1192_v16, %v1190_v47 }
 0x10c   :  { %v1196_v20 = vpop.permute.xlu0 %270  ;;  %v1198_v23 = vpop.permute.xlu1 %272 }
 0x10d   :  { %v275_v34 = vsel %vm274_vm2, %v1196_v20, %v1198_v23 }
 0x112   :  { %v1203_v26 = vpop.permute.xlu0 %292 }
 0x113   :  { %v1205_v27 = vpop.permute.xlu1 %294 }
 0x114   :  { %v297_v56 = vsel %vm296_vm3, %v1203_v26, %v1205_v27  ;;  %v298_v8 = vsel %vm296_vm3, %v1205_v27, %v1203_v26  ;;  %v253_v27 = vsel %vm252_vm1, %v1190_v47, %v1192_v16  ;;  %v276_v47 = vsel %vm274_vm2, %v1198_v23, %v1196_v20 }
 0x115   :  { %v312_v16 = vmul.f32 %v305_v5, %v298_v8  ;;  %v313_v26 = vmul.f32 %v309_v53, %v297_v56  ;;  %v232_v23 = vsel %vm231_vm4, %v1186_v14, %v1188_v62  ;;  %v268_v8 = vmul.f32 %v261_v57, %v254_v51 }
 0x116   :  { %v247_v40 = vmul.f32 %v243_v61, %v232_v23  ;;  %v397_v61 = vrot.slane %v1450_v25, %v1235_v44  ;;  %v1584_v25 = vrot.slane %v1320_v50, %v1235_v44 }
 0x119   :  { %v1211_v35 = vpop.permute.xlu0 %314  ;;  %v1213_v37 = vpop.permute.xlu1 %316 }
 0x11a   :  { %v319_v33 = vsel %vm318_vm5, %v1211_v35, %v1213_v37 }
 0x11d   :  { %v1219_v12 = vpop.permute.xlu0 %336  ;;  %v1221_v21 = vpop.permute.xlu1 %338 }
 0x11e   :  { %v342_v20 = vsel %vm340_vm6, %v1221_v21, %v1219_v12 }
 0x11f   :  { %v357_v57 = vmul.f32 %v353_v10, %v342_v20 }
 0x121   :  { %v1237_v45 = vpop.permute.xlu0 %358  ;;  %v1239_v46 = vpop.permute.xlu1 %360 }
 0x122   :  { %v363_v54 = vsel %vm362_vm7, %v1237_v45, %v1239_v46  ;;  %v364_v28 = vsel %vm362_vm7, %v1239_v46, %v1237_v45  ;;  %v320_v45 = vsel %vm318_vm5, %v1213_v37, %v1211_v35  ;;  %v341_v46 = vsel %vm340_vm6, %v1219_v12, %v1221_v21 }
 0x123   :  { %v233_v35 = vsel %vm231_vm4, %v1188_v62, %v1186_v14  ;;  %v378_v37 = vmul.f32 %v371_v29, %v363_v54  ;;  %v379_v5 = vmul.f32 %v375_v31, %v364_v28  ;;  %v269_v12 = vmul.f32 %v265_v63, %v253_v27  ;;  %v893_v62 = vld [vmem:[%s1578_s2 + $0xe] sm:$0x3] }
 0x124   :  { %v290_v21 = vmul.f32 %v283_v1, %v276_v47  ;;  %v291_v14 = vmul.f32 %v287_v4, %v275_v34  ;;  %v334_v29 = vmul.f32 %v327_v52, %v319_v33  ;;  %v335_v31 = vmul.f32 %v331_v6, %v320_v45  ;;  %v1461_v52 = vld [vmem:[%s1578_s2 + $0x10] sm:$0x3] }
 0x125   :  { %v1279_v2 = vpop.permute.xlu0 %654  ;;  %v1281_v3 = vpop.permute.xlu1 %656  ;;  %v356_v54 = vmul.f32 %v349_v18, %v341_v46  ;;  %v246_v63 = vmul.f32 %v239_v55, %v233_v35  ;;  %v409_v18 = vadd.f32 %v379_v5, %v357_v57  ;;  %v785_v27 = vrot.slane %v893_v62, %v1224_v42 }
 0x126   :  { %v404_v1 = vadd.f32 %v312_v16, %v290_v21  ;;  %v405_v4 = vadd.f32 %v313_v26, %v291_v14  ;;  %v789_v51 = vrot.slane %v893_v62, %v1235_v44  ;;  %v403_v28 = vadd.f32 %v269_v12, %v247_v40 }
 0x127   :  { %v408_v6 = vadd.f32 %v378_v37, %v356_v54  ;;  %v402_v55 = vadd.f32 %v268_v8, %v246_v63  ;;  %v406_v26 = vadd.f32 %v334_v29, %v1290_v48  ;;  %v407_v34 = vadd.f32 %v335_v31, %v1311_v11 }
 0x128   :  { %v805_v47 = vrot.slane %v1461_v52, %v1224_v42  ;;  %v809_v16 = vrot.slane %v1461_v52, %v1235_v44  ;;  %v411_v46 = vadd.f32 %v405_v4, %v403_v28  ;;  %v658_v20 = vsel %vm231_vm4, %v1279_v2, %v1281_v3 }
 0x129   :  { %v1330_v19 = vpop.permute.xlu0 %674  ;;  %v1332_v38 = vpop.permute.xlu1 %676  ;;  %v410_v45 = vadd.f32 %v404_v1, %v402_v55  ;;  %v659_v48 = vsel %vm231_vm4, %v1281_v3, %v1279_v2  ;;  %v412_v11 = vadd.f32 %v408_v6, %v406_v26  ;;  %v413_v23 = vadd.f32 %v409_v18, %v407_v34 }
 0x12a   :  { %v678_v12 = vsel %vm252_vm1, %v1330_v19, %v1332_v38  ;;  %v679_v2 = vsel %vm252_vm1, %v1332_v38, %v1330_v19  ;;  %v1581_v62 = vrot.slane %v1309_v7, %v1224_v42  ;;  %v1583_v54 = vrot.slane %v1320_v50, %v1224_v42 }
 0x12b   :  { %v1586_v40 = vrot.slane %v1350_v30, %v1235_v44  ;;  %v414_v50 = vadd.f32 %v412_v11, %v410_v45  ;;  %v935_v52 = vmov 1966171168  }
 0x12c   :  { %v692_v29 = vmul.f32 %v1581_v62, %v679_v2 }
 0x12d   :  { %v1372_v13 = vpop.permute.xlu0 %694  ;;  %v1374_v41 = vpop.permute.xlu1 %696 }
 0x12e   :  { %v698_v14 = vsel %vm274_vm2, %v1372_v13, %v1374_v41  ;;  %v699_v19 = vsel %vm274_vm2, %v1374_v41, %v1372_v13  ;;  %v1582_v13 = vrot.slane %v1309_v7, %v1235_v44 }
 0x12f   :  { %v712_v57 = vmul.f32 %v1583_v54, %v699_v19  ;;  %v713_v63 = vmul.f32 %v1584_v25, %v698_v14 }
 0x130   :  { %v693_v41 = vmul.f32 %v1582_v13, %v678_v12 }
 0x131   :  { %v715_v53 = vpop.permute.xlu0 %714  ;;  %v717_v56 = vpop.permute.xlu1 %716 }
 0x132   :  { %v718_v35 = vsel %vm296_vm3, %v715_v53, %v717_v56  ;;  %v719_v37 = vsel %vm296_vm3, %v717_v56, %v715_v53  ;;  %v672_v53 = vmul.f32 %v665_v15, %v659_v48  ;;  %v673_v56 = vmul.f32 %v669_v39, %v658_v20 }
 0x133   :  { %v732_v38 = vmul.f32 %v725_v49, %v719_v37  ;;  %v733_v15 = vmul.f32 %v729_v17, %v718_v35 }
 0x134   :  { %v814_v35 = vadd.f32 %v692_v29, %v672_v53  ;;  %v815_v37 = vadd.f32 %v693_v41, %v673_v56 }
 0x135   :  { %v735_v10 = vpop.permute.xlu0 %734  ;;  %v737_v33 = vpop.permute.xlu1 %736  ;;  %v816_v18 = vadd.f32 %v732_v38, %v712_v57 }
 0x136   :  { %v738_v3 = vsel %vm318_vm5, %v735_v10, %v737_v33  ;;  %v739_v21 = vsel %vm318_vm5, %v737_v33, %v735_v10  ;;  %v817_v10 = vadd.f32 %v733_v15, %v713_v63  ;;  %v415_v33 = vadd.f32 %v413_v23, %v411_v46 }
 0x137   :  { %v752_v49 = vmul.f32 %v745_v59, %v738_v3  ;;  %v753_v24 = vmul.f32 %v749_v32, %v739_v21  ;;  %v822_v11 = vadd.f32 %v816_v18, %v814_v35 }
 0x139   :  { %v755_v5 = vpop.permute.xlu0 %754  ;;  %v757_v8 = vpop.permute.xlu1 %756  ;;  %v818_v55 = vadd.f32 %v752_v49, %v1368_v22  ;;  %v819_v28 = vadd.f32 %v753_v24, %v1376_v58  ;;  %v823_v22 = vadd.f32 %v817_v10, %v815_v37 }
 0x13a   :  { %v758_v0 = vsel %vm340_vm6, %v755_v5, %v757_v8  ;;  %v759_v39 = vsel %vm340_vm6, %v757_v8, %v755_v5 }
 0x13b   :  { %v772_v32 = vmul.f32 %v1585_v60, %v758_v0  ;;  %v773_v1 = vmul.f32 %v1586_v40, %v759_v39 }
 0x13d   :  { %v775_v17 = vpop.permute.xlu0 %774  ;;  %v777_v31 = vpop.permute.xlu1 %776 }
 0x13e   :  { %v778_v7 = vsel %vm362_vm7, %v775_v17, %v777_v31  ;;  %v779_v59 = vsel %vm362_vm7, %v777_v31, %v775_v17 }
 0x13f   :  { %v792_v4 = vmul.f32 %v785_v27, %v778_v7  ;;  %v793_v6 = vmul.f32 %v789_v51, %v779_v59 }
 0x141   :  { %v820_v26 = vadd.f32 %v792_v4, %v772_v32  ;;  %v821_v34 = vadd.f32 %v793_v6, %v773_v1  ;;  %v381_v20 = vpop.permute.xlu0 %380  ;;  %v383_v48 = vpop.permute.xlu1 %382  ;;  %v1587_v32 = vlaneseq }
 0x142   :  { %v385_v30 = vsel %vm384_vm8, %v381_v20, %v383_v48  ;;  %v386_v27 = vsel %vm384_vm8, %v383_v48, %v381_v20 }
 0x143   :  { %v824_v51 = vadd.f32 %v820_v26, %v818_v55  ;;  %v825_v5 = vadd.f32 %v821_v34, %v819_v28  ;;  %v400_v45 = vmul.f32 %v393_v36, %v385_v30  ;;  %v401_v46 = vmul.f32 %v397_v61, %v386_v27 }
 0x144   :  { %vm448_vm9 = vcmp.lt.s32.totalorder %v1587_v32, 256 }
 0x145   :  { %v416_v23 = vadd.f32 %v414_v50, %v400_v45  ;;  %v417_v58 = vadd.f32 %v415_v33, %v401_v46  ;;  %v795_v8 = vpop.permute.xlu0 %794  ;;  %v797_v12 = vpop.permute.xlu1 %796  ;;  %v826_v2 = vadd.f32 %v824_v51, %v822_v11  ;;  %v827_v3 = vadd.f32 %v825_v5, %v823_v22 }
 0x146   :  { %v798_v21 = vsel %vm384_vm8, %v795_v8, %v797_v12  ;;  %v799_v53 = vsel %vm384_vm8, %v797_v12, %v795_v8 }
 0x147   :  { %v418_v56 = vsub.f32 0.0, %v416_v23  ;;  %v419_v14 = vsub.f32 0.0, %v417_v58  ;;  %v812_v36 = vmul.f32 %v805_v47, %v798_v21  ;;  %v813_v61 = vmul.f32 %v809_v16, %v799_v53 }
 0x148   :  { %v432_v16 = vunpack.c.l.s4 %v935_v52 }
 0x149   :  { %v420_v19 = vmul.f32 1.442695, %v418_v56  ;;  %v422_v38 = vmul.f32 1.442695, %v419_v14  ;;  %v828_v15 = vadd.f32 %v826_v2, %v812_v36  ;;  %v829_v0 = vadd.f32 %v827_v3, %v813_v61 }
 0x14a   :  { %v433_v31 = vunpack.c.0.s8 %v432_v16 }
 0x14b   :  { %910 = vpow2.f32 %v420_v19  ;;  %v830_v39 = vsub.f32 0.0, %v828_v15  ;;  %v831_v62 = vsub.f32 0.0, %v829_v0 }
 0x14c   :  { %912 = vpow2.f32 %v422_v38  ;;  %v436_v57 = vsub.s32 %v433_v31, %v1217_v9 }
 0x14d   :  { %v832_v43 = vmul.f32 1.442695, %v830_v39  ;;  %v834_v29 = vmul.f32 1.442695, %v831_v62 }
 0x14f   :  { %914 = vpow2.f32 %v832_v43 }
 0x150   :  { %916 = vpow2.f32 %v834_v29 }
 0x155   :  { %v911_v13 = vpop.eup %910 }
 0x156   :  { %v913_v41 = vpop.eup %912  ;;  %v424_v42 = vadd.f32 1.0, %v911_v13 }
 0x157   :  { %v425_v47 = vadd.f32 1.0, %v913_v41 }
 0x158   :  { %918 = vrcp.f32 %v424_v42 }
 0x159   :  { %v915_v49 = vpop.eup %914  ;;  %920 = vrcp.f32 %v425_v47 }
 0x15a   :  { %v917_v44 = vpop.eup %916  ;;  %v836_v24 = vadd.f32 1.0, %v915_v49 }
 0x15b   :  { %v837_v17 = vadd.f32 1.0, %v917_v44 }
 0x15c   :  { %922 = vrcp.f32 %v836_v24 }
 0x15d   :  { %924 = vrcp.f32 %v837_v17 }
 0x162   :  { %v919_v54 = vpop.eup %918 }
 0x163   :  { %v921_v25 = vpop.eup %920 }
 0x164   :  { %v430_v63 = vcombine.low %v919_v54, %v921_v25 }
 0x166   :  { %v923_v7 = vpop.eup %922  ;;  %v437_v59 = vrot.slane %v430_v63, %v436_v57 }
 0x167   :  { %v925_v60 = vpop.eup %924 }
 0x168   :  { %v444_v40 = vrot.slane %v437_v59, %v436_v57  ;;  %v842_v1 = vcombine.low %v923_v7, %v925_v60 }
 0x16a   :  { %450 = vst.msk [vmem:[%s1579_s3] ss:$2 sm:$0x3] %vm448_vm9, %v444_v40  ;;  %v849_v4 = vrot.slane %v842_v1, %v436_v57 }
 0x16c   :  { %v856_v6 = vrot.slane %v849_v4, %v436_v57 }
 0x16e   :  { %895 = vst.msk [vmem:[%s1579_s3 + $0x1] ss:$2 sm:$0x3] %vm448_vm9, %v856_v6 }

</bundles_post_ra>
